<compile_context>
chip_gen: v6e
topology: v6e:2x2x1
jax: 0.10.0
libtpu: 0.0.40
codegen_flags: <defaults>
</compile_context>

<pallas_src>
import jax
import jax.numpy as jnp
from jax.experimental import pallas as pl
from jax.experimental.pallas import tpu as pltpu

SUBLANE = 8  # f32 sublane width (second-to-last dim granularity)


def _round_up(n, m):
    return ((n + m - 1) // m) * m


# ---------------------------------------------------------------------------
# Kernel: one fused pass over all four Linear (+ReLU / +Sigmoid) layers.
# ---------------------------------------------------------------------------
def _ae_kernel(x_ref,
               w1_ref, b1_ref,
               w2_ref, b2_ref,
               w3_ref, b3_ref,
               w4_ref, b4_ref,
               dec_ref, enc_ref):
    bf16 = jnp.bfloat16
    f32 = jnp.float32

    # Encoder: Linear -> ReLU -> Linear   (bf16 operands, f32 MXU accumulate)
    x = x_ref[...].astype(bf16)
    h1 = jnp.dot(x, w1_ref[...], preferred_element_type=f32) + b1_ref[...]
    h1 = jnp.maximum(h1, 0.0)
    enc = jnp.dot(h1.astype(bf16), w2_ref[...], preferred_element_type=f32) + b2_ref[...]
    enc_ref[...] = enc.astype(enc_ref.dtype)

    # Decoder: Linear -> ReLU -> Linear -> Sigmoid
    h2 = jnp.dot(enc.astype(bf16), w3_ref[...], preferred_element_type=f32) + b3_ref[...]
    h2 = jnp.maximum(h2, 0.0)
    logits = jnp.dot(h2.astype(bf16), w4_ref[...], preferred_element_type=f32) + b4_ref[...]
    dec_ref[...] = jax.nn.sigmoid(logits).astype(dec_ref.dtype)


# ---------------------------------------------------------------------------
# Parameter preparation (one-time, outside the per-call path).
# ---------------------------------------------------------------------------
def prepare_params(params):
    """One-time conversion into the kernel layout: weights [in, out] cast to
    bf16 (halves per-call HBM weight reads, feeds the bf16 MXU); biases f32
    with shape [1, out].  Call once and reuse the result for every forward."""
    out = {}
    for k, v in params.items():
        v = jnp.asarray(v)
        if k.startswith("w"):
            out[k] = v.astype(jnp.bfloat16)
        else:
            out[k] = v.reshape(1, -1).astype(jnp.float32)
    return out


def _vmem_budget_rows(input_dim, hidden_dim, bottleneck_dim, budget_bytes):
    """Max batch-tile rows that keep an estimated VMEM footprint under budget."""
    # Resident weights (bf16) / biases (f32); default pipeline double-buffers them.
    w_bytes = 2 * 2 * (input_dim * hidden_dim + hidden_dim * bottleneck_dim
                       + bottleneck_dim * hidden_dim + hidden_dim * input_dim)
    b_bytes = 2 * 4 * (2 * hidden_dim + bottleneck_dim + input_dim)
    # Per-row: double-buffered x / dec / enc blocks (f32) + f32 intermediates
    # (h1, enc, h2, logits) + transient bf16 copies of the matmul operands.
    per_row = (2 * 4 * input_dim                      # x block (2 buffers)
               + 2 * 4 * input_dim                    # dec block (2 buffers)
               + 2 * 4 * bottleneck_dim               # enc block (2 buffers)
               + 4 * (2 * hidden_dim + bottleneck_dim + input_dim)
               + 2 * (2 * hidden_dim + bottleneck_dim + 2 * input_dim))
    rows = (budget_bytes - w_bytes - b_bytes) // max(per_row, 1)
    return max(SUBLANE, (int(rows) // SUBLANE) * SUBLANE)


# ---------------------------------------------------------------------------
# Wrapper.
# ---------------------------------------------------------------------------
def matimosiej_forward(x, prepared, *, batch_tile=None):
    """Autoencoder forward as a single fused Pallas kernel.

    x: [B, input_dim].  prepared: output of prepare_params().
    Returns (decoded [B, input_dim] f32, encoded [B, bottleneck_dim] f32).
    """
    w1, b1 = prepared["w1"], prepared["b1"]
    w2, b2 = prepared["w2"], prepared["b2"]
    w3, b3 = prepared["w3"], prepared["b3"]
    w4, b4 = prepared["w4"], prepared["b4"]

    B = x.shape[0]
    input_dim, hidden_dim = w1.shape
    bottleneck_dim = w2.shape[1]

    # VMEM capacity is generation-dependent (v7x: 64 MiB/TC, v6e/v5e: 128 MiB).
    try:
        vmem_cap = int(pltpu.get_tpu_info().vmem_capacity_bytes)
    except Exception:
        vmem_cap = 64 << 20  # conservative fallback (v7x per-core VMEM)
    vmem_limit = max(32 << 20, min(int(0.75 * vmem_cap), 96 << 20))

    # --- batch tiling -------------------------------------------------------
    B_p8 = _round_up(max(B, SUBLANE), SUBLANE)
    if batch_tile is None:
        max_rows = _vmem_budget_rows(input_dim, hidden_dim, bottleneck_dim,
                                     int(0.6 * vmem_limit))
        desired = min(512, max_rows)           # ~512-row tiles: >=85% HBM roofline
        n_tiles = pl.cdiv(B_p8, desired)
        if n_tiles == 1 and B_p8 >= 256:
            n_tiles = 2                        # feed v7x's 2nd TC / overlap DMA
        batch_tile = _round_up(pl.cdiv(B_p8, n_tiles), SUBLANE)
    else:
        batch_tile = _round_up(min(int(batch_tile), B_p8), SUBLANE)
    n_tiles = pl.cdiv(B_p8, batch_tile)
    B_pad = n_tiles * batch_tile               # over-pad is < 8 * n_tiles rows

    x_in = x if B_pad == B else jnp.pad(x, ((0, B_pad - B), (0, 0)))

    # Weights/biases: constant index_map -> same block every step (resident).
    resident = lambda shape: pl.BlockSpec(shape, lambda i: (0, 0))

    grid_spec = pl.GridSpec(
        grid=(n_tiles,),
        in_specs=[
            pl.BlockSpec((batch_tile, input_dim), lambda i: (i, 0)),       # x tile
            resident((input_dim, hidden_dim)),  resident((1, hidden_dim)),  # w1, b1
            resident((hidden_dim, bottleneck_dim)), resident((1, bottleneck_dim)),  # w2, b2
            resident((bottleneck_dim, hidden_dim)), resident((1, hidden_dim)),      # w3, b3
            resident((hidden_dim, input_dim)),  resident((1, input_dim)),   # w4, b4
        ],
        out_specs=[
            pl.BlockSpec((batch_tile, input_dim), lambda i: (i, 0)),        # decoded
            pl.BlockSpec((batch_tile, bottleneck_dim), lambda i: (i, 0)),   # encoded
        ],
    )

    dec_p, enc_p = pl.pallas_call(
        _ae_kernel,
        out_shape=(
            jax.ShapeDtypeStruct((B_pad, input_dim), jnp.float32),
            jax.ShapeDtypeStruct((B_pad, bottleneck_dim), jnp.float32),
        ),
        grid_spec=grid_spec,
        compiler_params=pltpu.CompilerParams(
            dimension_semantics=("parallel",),       # batch tiles are independent
            vmem_limit_bytes=vmem_limit,
        ),
    )(x_in, w1, b1, w2, b2, w3, b3, w4, b4)

    if B_pad != B:
        dec_p, enc_p = dec_p[:B], enc_p[:B]
    return dec_p, enc_p


# ---------------------------------------------------------------------------
# Init + pure-JAX reference (bf16-operand math matching the kernel).
# ---------------------------------------------------------------------------
def init_params(key, input_dim, hidden_dim, bottleneck_dim):
    """PyTorch nn.Linear-style init (U[-1/sqrt(fan_in), +1/sqrt(fan_in)]).
    Weights stored transposed: [in_features, out_features]; biases [1, out]."""
    def linear(k, fan_in, fan_out):
        kw, kb = jax.random.split(k)
        bound = 1.0 / jnp.sqrt(fan_in)
        w = jax.random.uniform(kw, (fan_in, fan_out), jnp.float32, -bound, bound)
        b = jax.random.uniform(kb, (1, fan_out), jnp.float32, -bound, bound)
        return w, b

    k1, k2, k3, k4 = jax.random.split(key, 4)
    w1, b1 = linear(k1, input_dim, hidden_dim)        # mAtI[0]
    w2, b2 = linear(k2, hidden_dim, bottleneck_dim)   # mAtI[2]
    w3, b3 = linear(k3, bottleneck_dim, hidden_dim)   # mOsIeJ[0]
    w4, b4 = linear(k4, hidden_dim, input_dim)        # mOsIeJ[2]
    return dict(w1=w1, b1=b1, w2=w2, b2=b2, w3=w3, b3=b3, w4=w4, b4=b4)


def reference_forward(x, p):
    """Pure-JAX reference using the same bf16-operand / f32-accumulate math."""
    bf16, f32 = jnp.bfloat16, jnp.float32
    dot = lambda a, w: jnp.dot(a.astype(bf16), w.astype(bf16),
                               preferred_element_type=f32)
    h1 = jnp.maximum(dot(x, p["w1"]) + p["b1"], 0.0)
    enc = dot(h1, p["w2"]) + p["b2"]
    h2 = jnp.maximum(dot(enc, p["w3"]) + p["b3"], 0.0)
    dec = jax.nn.sigmoid(dot(h2, p["w4"]) + p["b4"])
    return dec, enc


if __name__ == "__main__":
    key = jax.random.PRNGKey(0)
    kx, kp, kx2 = jax.random.split(key, 3)

    batch, input_dim, hidden_dim, bottleneck_dim = 16, 32, 64, 16
    params = init_params(kp, input_dim, hidden_dim, bottleneck_dim)
    prepared = prepare_params(params)   # one-time weight cast (cache & reuse)

    # Small-batch case (single grid step).
    x = jax.random.normal(kx, (batch, input_dim), jnp.float32)
    dec, enc = jax.block_until_ready(matimosiej_forward(x, prepared))
    assert dec.shape == (batch, input_dim)
    assert enc.shape == (batch, bottleneck_dim)
    dec_r, enc_r = reference_forward(x, params)
    assert jnp.allclose(dec, dec_r, atol=2e-3, rtol=2e-3)
    assert jnp.allclose(enc, enc_r, atol=2e-3, rtol=2e-3)

    # Larger batch: exercises the multi-tile parallel grid + row pad/slice path.
    x2 = jax.random.normal(kx2, (600, input_dim), jnp.float32)
    dec2, enc2 = jax.block_until_ready(matimosiej_forward(x2, prepared))
    assert dec2.shape == (600, input_dim)
    assert enc2.shape == (600, bottleneck_dim)
    dec2_r, enc2_r = reference_forward(x2, params)
    assert jnp.allclose(dec2, dec2_r, atol=2e-3, rtol=2e-3)
    assert jnp.allclose(enc2, enc2_r, atol=2e-3, rtol=2e-3)

    print("KERNEL_OK")
</pallas_src>

<mosaic_0001>
module attributes {stable_mosaic.version = 11 : i64} {
  func.func @_ae_kernel(%arg0: i32, %arg1: memref<16x32xf32, #tpu.memory_space<vmem>>, %arg2: memref<32x64xbf16, #tpu.memory_space<vmem>>, %arg3: memref<1x64xf32, #tpu.memory_space<vmem>>, %arg4: memref<64x16xbf16, #tpu.memory_space<vmem>>, %arg5: memref<1x16xf32, #tpu.memory_space<vmem>>, %arg6: memref<16x64xbf16, #tpu.memory_space<vmem>>, %arg7: memref<1x64xf32, #tpu.memory_space<vmem>>, %arg8: memref<64x32xbf16, #tpu.memory_space<vmem>>, %arg9: memref<1x32xf32, #tpu.memory_space<vmem>>, %arg10: memref<16x32xf32, #tpu.memory_space<vmem>>, %arg11: memref<16x16xf32, #tpu.memory_space<vmem>>) attributes {dimension_semantics = [#tpu.dimension_semantics<parallel>], iteration_bounds = array<i64: 1>, scalar_prefetch = 0 : i64, scratch_operands = 0 : i64, tpu.core_type = #tpu.core_type<tc>, window_params = [{transform_indices = @transform_0, window_bounds = array<i64: 16, 32>}, {pipeline_mode = #tpu.pipeline_mode<synchronous>, transform_indices = @transform_1, window_bounds = array<i64: 32, 64>}, {pipeline_mode = #tpu.pipeline_mode<synchronous>, transform_indices = @transform_2, window_bounds = array<i64: 1, 64>}, {pipeline_mode = #tpu.pipeline_mode<synchronous>, transform_indices = @transform_3, window_bounds = array<i64: 64, 16>}, {pipeline_mode = #tpu.pipeline_mode<synchronous>, transform_indices = @transform_4, window_bounds = array<i64: 1, 16>}, {pipeline_mode = #tpu.pipeline_mode<synchronous>, transform_indices = @transform_5, window_bounds = array<i64: 16, 64>}, {pipeline_mode = #tpu.pipeline_mode<synchronous>, transform_indices = @transform_6, window_bounds = array<i64: 1, 64>}, {pipeline_mode = #tpu.pipeline_mode<synchronous>, transform_indices = @transform_7, window_bounds = array<i64: 64, 32>}, {pipeline_mode = #tpu.pipeline_mode<synchronous>, transform_indices = @transform_8, window_bounds = array<i64: 1, 32>}, {transform_indices = @transform_9, window_bounds = array<i64: 16, 32>}, {transform_indices = @transform_10, window_bounds = array<i64: 16, 16>}]} {
    %c0 = arith.constant 0 : index
    %c0_0 = arith.constant 0 : index
    %0 = vector.load %arg1[%c0, %c0_0] : memref<16x32xf32, #tpu.memory_space<vmem>>, vector<16x32xf32>
    %1 = arith.truncf %0 : vector<16x32xf32> to vector<16x32xbf16>
    %c0_1 = arith.constant 0 : index
    %c0_2 = arith.constant 0 : index
    %2 = vector.load %arg2[%c0_1, %c0_2] : memref<32x64xbf16, #tpu.memory_space<vmem>>, vector<32x64xbf16>
    %cst = arith.constant dense<0.000000e+00> : vector<16x64xf32>
    %3 = tpu.matmul %1, %2, %cst {dimension_numbers = #tpu.dot_dimension_numbers<[1], [0], [0], [1], [0, 0, 1, 1], [], []>} : vector<16x32xbf16>, vector<32x64xbf16>, vector<16x64xf32> -> vector<16x64xf32>
    %c0_3 = arith.constant 0 : index
    %c0_4 = arith.constant 0 : index
    %4 = vector.load %arg3[%c0_3, %c0_4] : memref<1x64xf32, #tpu.memory_space<vmem>>, vector<1x64xf32>
    %5 = vector.broadcast %4 : vector<1x64xf32> to vector<16x64xf32>
    %6 = arith.addf %3, %5 : vector<16x64xf32>
    %cst_5 = arith.constant 0.000000e+00 : f32
    %7 = vector.broadcast %cst_5 : f32 to vector<16x64xf32>
    %8 = arith.maximumf %6, %7 : vector<16x64xf32>
    %9 = arith.truncf %8 : vector<16x64xf32> to vector<16x64xbf16>
    %c0_6 = arith.constant 0 : index
    %c0_7 = arith.constant 0 : index
    %10 = vector.load %arg4[%c0_6, %c0_7] : memref<64x16xbf16, #tpu.memory_space<vmem>>, vector<64x16xbf16>
    %cst_8 = arith.constant dense<0.000000e+00> : vector<16x16xf32>
    %11 = tpu.matmul %9, %10, %cst_8 {dimension_numbers = #tpu.dot_dimension_numbers<[1], [0], [0], [1], [0, 0, 1, 1], [], []>} : vector<16x64xbf16>, vector<64x16xbf16>, vector<16x16xf32> -> vector<16x16xf32>
    %c0_9 = arith.constant 0 : index
    %c0_10 = arith.constant 0 : index
    %12 = vector.load %arg5[%c0_9, %c0_10] : memref<1x16xf32, #tpu.memory_space<vmem>>, vector<1x16xf32>
    %13 = vector.broadcast %12 : vector<1x16xf32> to vector<16x16xf32>
    %14 = arith.addf %11, %13 : vector<16x16xf32>
    %c0_11 = arith.constant 0 : index
    %c0_12 = arith.constant 0 : index
    %15 = vector.load %arg11[%c0_11, %c0_12] : memref<16x16xf32, #tpu.memory_space<vmem>>, vector<16x16xf32>
    tpu.vector_store %arg11[%c0_11, %c0_12], %14 {strides = array<i32>} : memref<16x16xf32, #tpu.memory_space<vmem>>, vector<16x16xf32>,
    %16 = arith.truncf %14 : vector<16x16xf32> to vector<16x16xbf16>
    %c0_13 = arith.constant 0 : index
    %c0_14 = arith.constant 0 : index
    %17 = vector.load %arg6[%c0_13, %c0_14] : memref<16x64xbf16, #tpu.memory_space<vmem>>, vector<16x64xbf16>
    %cst_15 = arith.constant dense<0.000000e+00> : vector<16x64xf32>
    %18 = tpu.matmul %16, %17, %cst_15 {dimension_numbers = #tpu.dot_dimension_numbers<[1], [0], [0], [1], [0, 0, 1, 1], [], []>} : vector<16x16xbf16>, vector<16x64xbf16>, vector<16x64xf32> -> vector<16x64xf32>
    %c0_16 = arith.constant 0 : index
    %c0_17 = arith.constant 0 : index
    %19 = vector.load %arg7[%c0_16, %c0_17] : memref<1x64xf32, #tpu.memory_space<vmem>>, vector<1x64xf32>
    %20 = vector.broadcast %19 : vector<1x64xf32> to vector<16x64xf32>
    %21 = arith.addf %18, %20 : vector<16x64xf32>
    %cst_18 = arith.constant 0.000000e+00 : f32
    %22 = vector.broadcast %cst_18 : f32 to vector<16x64xf32>
    %23 = arith.maximumf %21, %22 : vector<16x64xf32>
    %24 = arith.truncf %23 : vector<16x64xf32> to vector<16x64xbf16>
    %c0_19 = arith.constant 0 : index
    %c0_20 = arith.constant 0 : index
    %25 = vector.load %arg8[%c0_19, %c0_20] : memref<64x32xbf16, #tpu.memory_space<vmem>>, vector<64x32xbf16>
    %cst_21 = arith.constant dense<0.000000e+00> : vector<16x32xf32>
    %26 = tpu.matmul %24, %25, %cst_21 {dimension_numbers = #tpu.dot_dimension_numbers<[1], [0], [0], [1], [0, 0, 1, 1], [], []>} : vector<16x64xbf16>, vector<64x32xbf16>, vector<16x32xf32> -> vector<16x32xf32>
    %c0_22 = arith.constant 0 : index
    %c0_23 = arith.constant 0 : index
    %27 = vector.load %arg9[%c0_22, %c0_23] : memref<1x32xf32, #tpu.memory_space<vmem>>, vector<1x32xf32>
    %28 = vector.broadcast %27 : vector<1x32xf32> to vector<16x32xf32>
    %29 = arith.addf %26, %28 : vector<16x32xf32>
    %30 = arith.negf %29 : vector<16x32xf32>
    %31 = math.exp %30 : vector<16x32xf32>
    %cst_24 = arith.constant 1.000000e+00 : f32
    %32 = vector.broadcast %cst_24 : f32 to vector<16x32xf32>
    %33 = arith.addf %32, %31 : vector<16x32xf32>
    %34 = arith.divf %32, %33 : vector<16x32xf32>
    %c0_25 = arith.constant 0 : index
    %c0_26 = arith.constant 0 : index
    %35 = vector.load %arg10[%c0_25, %c0_26] : memref<16x32xf32, #tpu.memory_space<vmem>>, vector<16x32xf32>
    tpu.vector_store %arg10[%c0_25, %c0_26], %34 {strides = array<i32>} : memref<16x32xf32, #tpu.memory_space<vmem>>, vector<16x32xf32>,
    return
  }
  func.func @transform_0(%arg0: i32) -> (i32, i32) {
    %c0_i32 = arith.constant 0 : i32
    %c0_i32_0 = arith.constant 0 : i32
    return %arg0, %c0_i32 : i32, i32
  }
  func.func @transform_1(%arg0: i32) -> (i32, i32) {
    %c0_i32 = arith.constant 0 : i32
    %c0_i32_0 = arith.constant 0 : i32
    %c0_i32_1 = arith.constant 0 : i32
    return %c0_i32, %c0_i32_0 : i32, i32
  }
  func.func @transform_2(%arg0: i32) -> (i32, i32) {
    %c0_i32 = arith.constant 0 : i32
    %c0_i32_0 = arith.constant 0 : i32
    %c0_i32_1 = arith.constant 0 : i32
    return %c0_i32, %c0_i32_0 : i32, i32
  }
  func.func @transform_3(%arg0: i32) -> (i32, i32) {
    %c0_i32 = arith.constant 0 : i32
    %c0_i32_0 = arith.constant 0 : i32
    %c0_i32_1 = arith.constant 0 : i32
    return %c0_i32, %c0_i32_0 : i32, i32
  }
  func.func @transform_4(%arg0: i32) -> (i32, i32) {
    %c0_i32 = arith.constant 0 : i32
    %c0_i32_0 = arith.constant 0 : i32
    %c0_i32_1 = arith.constant 0 : i32
    return %c0_i32, %c0_i32_0 : i32, i32
  }
  func.func @transform_5(%arg0: i32) -> (i32, i32) {
    %c0_i32 = arith.constant 0 : i32
    %c0_i32_0 = arith.constant 0 : i32
    %c0_i32_1 = arith.constant 0 : i32
    return %c0_i32, %c0_i32_0 : i32, i32
  }
  func.func @transform_6(%arg0: i32) -> (i32, i32) {
    %c0_i32 = arith.constant 0 : i32
    %c0_i32_0 = arith.constant 0 : i32
    %c0_i32_1 = arith.constant 0 : i32
    return %c0_i32, %c0_i32_0 : i32, i32
  }
  func.func @transform_7(%arg0: i32) -> (i32, i32) {
    %c0_i32 = arith.constant 0 : i32
    %c0_i32_0 = arith.constant 0 : i32
    %c0_i32_1 = arith.constant 0 : i32
    return %c0_i32, %c0_i32_0 : i32, i32
  }
  func.func @transform_8(%arg0: i32) -> (i32, i32) {
    %c0_i32 = arith.constant 0 : i32
    %c0_i32_0 = arith.constant 0 : i32
    %c0_i32_1 = arith.constant 0 : i32
    return %c0_i32, %c0_i32_0 : i32, i32
  }
  func.func @transform_9(%arg0: i32) -> (i32, i32) {
    %c0_i32 = arith.constant 0 : i32
    %c0_i32_0 = arith.constant 0 : i32
    return %arg0, %c0_i32 : i32, i32
  }
  func.func @transform_10(%arg0: i32) -> (i32, i32) {
    %c0_i32 = arith.constant 0 : i32
    %c0_i32_0 = arith.constant 0 : i32
    return %arg0, %c0_i32 : i32, i32
  }
}

</mosaic_0001>

<bundles_post_ra>
// kernel: tpu_custom_call.1
= control target key start
LH: loop header
LB: loop body
LE: loop exit
PB: predicated region body
PF: predicated region fallthrough
CT: control target
= control target key end

     0   :  { %16 = vsyncpa [#allocation3], 0  ;;  %v533_v1 = vmov 0.0   ;;  %vm534_vm0 = vmmov 0   ;;  %vm63_vm1 = vcmask 261120   ;;  %s681_s0 = inlined_call_operand.vmem [shape: f32[16,32], index: 0, kind: input, shape index: {}]   ;;  %s682_s1 = inlined_call_operand.vmem [shape: bf16[32,64], index: 1, kind: input, shape index: {}]   ;;  %s683_s2 = inlined_call_operand.vmem [shape: f32[1,64], index: 2, kind: input, shape index: {}]   ;;  %s684_s3 = inlined_call_operand.vmem [shape: bf16[64,16], index: 3, kind: input, shape index: {}]   ;;  %s685_s4 = inlined_call_operand.vmem [shape: f32[1,16], index: 4, kind: input, shape index: {}]   ;;  %s686_s5 = inlined_call_operand.vmem [shape: bf16[16,64], index: 5, kind: input, shape index: {}]   ;;  %s687_s6 = inlined_call_operand.vmem [shape: f32[1,64], index: 6, kind: input, shape index: {}]   ;;  %s688_s7 = inlined_call_operand.vmem [shape: bf16[64,32], index: 7, kind: input, shape index: {}]   ;;  %s689_s8 = inlined_call_operand.vmem [shape: f32[1,32], index: 8, kind: input, shape index: {}]   ;;  %s690_s9 = inlined_call_operand.hbm [shape: f32[16,32], index: 9, kind: output, shape index: {0}]   ;;  %s691_s10 = inlined_call_operand.hbm [shape: f32[16,16], index: 10, kind: output, shape index: {1}]  }
   0x1   :  { %v470_v0 = vld [vmem:[%s682_s1 + $0x8] sm:$0xff]   ;;  %426 = vmatprep.subr.bf16.mxu1 %v533_v1  ;;  %v471_v2 = vld [vmem:[%s682_s1] sm:$0xff]   ;;  %446 = vmatprep.subr.bf16.mxu0 %v533_v1  ;;  %v472_v5 = vld [vmem:[%s684_s3 + $0x18] sm:$0xff]  }
   0x2   :  { %427 = vmatpush3.bf16.msra.mxu1 %v470_v0  ;;  %430 = vmatprep.mubr.msk.bf16.mxu1 %vm534_vm0, %v533_v1  ;;  %v37_v3 = vld [vmem:[%s681_s0] sm:$0xff]  ;;  %v38_v4 = vld [vmem:[%s681_s0 + $0x8] sm:$0xff] }
   0x3   :  { %428 = vmatprep.subr.bf16.mxu1 %v533_v1  ;;  %448 = vmatprep.mubr.msk.bf16.mxu0 %vm534_vm0, %v533_v1  ;;  %v39_v6 = vpack.c.bf16 %v38_v4, %v37_v3 }
   0x6   :  { %429 = vmatpush3.bf16.msra.mxu1 %v471_v2 }
   0x7   :  { %434 = vmatprep.subr.bf16.mxu1 %v533_v1 }
   0x9   :  { %431 = vmatmul.mubr.msk.bf16.vlgmr.msra.gmra.mxu1 %vm63_vm1, %v39_v6 }
   0xa   :  { %17 = vsyncpa [#allocation5], 0  ;;  %435 = vmatpush3.bf16.msra.mxu1 %v472_v5  ;;  %442 = vmatprep.mubr.msk.bf16.mxu1 %vm534_vm0, %v533_v1  ;;  %v473_v7 = vld [vmem:[%s684_s3 + $0x10] sm:$0xff]   ;;  %v474_v8 = vld [vmem:[%s684_s3 + $0x8] sm:$0xff]   ;;  %vm150_vm2 = vcmask 523264   ;;  %vm195_vm3 = vcmask 130048  }
   0xb   :  { %436 = vmatprep.subr.bf16.mxu1 %v533_v1  ;;  %v475_v9 = vld [vmem:[%s684_s3] sm:$0xff]   ;;  %v477_v28 = vld [vmem:[%s688_s7 + $0x18] sm:$0xff]   ;;  %v478_v30 = vld [vmem:[%s688_s7 + $0x10] sm:$0xff]   ;;  %s535_s19 = smov [#allocation4]  }
   0xc   :  { %v390_v10 = vld [vmem:[%s683_s2] ss:$0 sm:$0xff]  ;;  %v479_v31 = vld [vmem:[%s688_s7 + $0x8] sm:$0xff]   ;;  %s375_s20 = sshll.u32 %s535_s19, 4  ;;  %s376_s20 = int_to_ptr.vmem [resolvable:$true] %s375_s20 }
   0xd   :  { %v476_v20 = vld [vmem:[%s686_s5] sm:$0xff]   ;;  %p494_p1 = scmp.lt.s32.totalorder %s376_s20, %s376_s20 }
   0xe   :  { %437 = vmatpush3.bf16.msra.mxu1 %v473_v7  ;;  %447 = vmatpush3.bf16.msra.mxu0 %v476_v20  ;;  %v394_v21 = vld [vmem:[%s685_s4] ss:$0 sm:$0xff] }
   0xf   :  { %438 = vmatprep.subr.bf16.mxu1 %v533_v1  ;;  %452 = vmatprep.subr.bf16.mxu0 %v533_v1  ;;  %v480_v32 = vld [vmem:[%s688_s7] sm:$0xff]   ;;  %s489_s7 = scalar_lea.vmem %s376_s20, 256 }
  0x10   :  { %v400_v33 = vld [vmem:[%s687_s6] ss:$0 sm:$0xff]  ;;  %p490_p0 = scmp.ne.s32.totalorder %s376_s20, %s489_s7  ;;  %p495_p2 = scmp.lt.s32.totalorder %s489_s7, %s489_s7 }
  0x12   :  { %439 = vmatpush3.bf16.msra.mxu1 %v474_v8  ;;  %p496_p3 = por %p495_p2, %p494_p1 }
  0x13   :  { %440 = vmatprep.subr.bf16.mxu1 %v533_v1 }
  0x14   :  { %p497_p4 = pnand %p496_p3, %p490_p0 }
  0x16   :  { %441 = vmatpush3.bf16.msra.mxu1 %v475_v9 }
  0xc9   :  { %v101_v11 = vpop.f32.mrf.mxu1 }
  0xca   :  { %v102_v13 = vadd.f32 %v390_v10, %v101_v11 }
  0xcb   :  { %v432_v12 = vpop.f32.mrf.mxu1 }
  0xcc   :  { %v108_v17 = vmax.f32 %v102_v13, 0.0 }
  0xcd   :  { %v104_v14 = vpop.f32.mrf.mxu1 }
  0xce   :  { %v105_v15 = vadd.f32 %v390_v10, %v104_v14 }
  0xcf   :  { %v433_v16 = vpop.f32.mrf.mxu1 }
  0xd0   :  { %v109_v18 = vmax.f32 %v105_v15, 0.0 }
  0xd2   :  { %v110_v19 = vpack.c.bf16 %v109_v18, %v108_v17 }
  0xd4   :  { %443 = vmatmul.mubr.msk.bf16.vlgmr.msra.gmra.mxu1 %vm150_vm2, %v110_v19 }
 0x194   :  { %v188_v22 = vpop.f32.mrf.mxu1 }
 0x195   :  { %v189_v23 = vadd.f32 %v394_v21, %v188_v22 }
 0x196   :  { %v444_v24 = vpop.f32.mrf.mxu1 }
 0x197   :  { %196 = vst.msk [vmem:[#allocation4] sm:$0xff] %vm195_vm3, %v189_v23 }
 0x198   :  { %v191_v25 = vpop.f32.mrf.mxu1 }
 0x199   :  { %v192_v26 = vadd.f32 %v394_v21, %v191_v25 }
 0x19a   :  { %v445_v27 = vpop.f32.mrf.mxu1 }
 0x19b   :  { %197 = vst.msk [vmem:[#allocation4 + $0x8] sm:$0xff] %vm195_vm3, %v192_v26  ;;  %v198_v29 = vpack.c.bf16 %v192_v26, %v189_v23 }
 0x19d   :  { %449 = vmatmul.mubr.msk.bf16.vlgmr.msra.gmra.mxu0 %vm195_vm3, %v198_v29 }
 0x19e   :  { %453 = vmatpush3.bf16.msra.mxu0 %v477_v28  ;;  %460 = vmatprep.mubr.msk.bf16.mxu0 %vm534_vm0, %v533_v1 }
 0x19f   :  { %454 = vmatprep.subr.bf16.mxu0 %v533_v1 }
 0x1a2   :  { %455 = vmatpush3.bf16.msra.mxu0 %v478_v30 }
 0x1a3   :  { %456 = vmatprep.subr.bf16.mxu0 %v533_v1 }
 0x1a6   :  { %457 = vmatpush3.bf16.msra.mxu0 %v479_v31 }
 0x1a7   :  { %458 = vmatprep.subr.bf16.mxu0 %v533_v1 }
 0x1aa   :  { %459 = vmatpush3.bf16.msra.mxu0 %v480_v32 }
 0x25d   :  { %v251_v34 = vpop.f32.mrf.mxu0 }
 0x25e   :  { %v252_v36 = vadd.f32 %v400_v33, %v251_v34 }
 0x25f   :  { %v450_v35 = vpop.f32.mrf.mxu0 }
 0x260   :  { %v258_v40 = vmax.f32 %v252_v36, 0.0 }
 0x261   :  { %v254_v37 = vpop.f32.mrf.mxu0 }
 0x262   :  { %v255_v38 = vadd.f32 %v400_v33, %v254_v37 }
 0x263   :  { %v451_v39 = vpop.f32.mrf.mxu0 }
 0x264   :  { %v259_v41 = vmax.f32 %v255_v38, 0.0 }
 0x266   :  { %v260_v42 = vpack.c.bf16 %v259_v41, %v258_v40 }
 0x268   :  { %461 = vmatmul.mubr.msk.bf16.vlgmr.msra.gmra.mxu0 %vm150_vm2, %v260_v42 }
 0x269   :  { %500 = shalt.err (!%p497_p4)
}
 0x26a   :  { %s536_s6 = smov 128   ;;  %s537_s1 = smov 8   ;;  %v403_v43 = vld [vmem:[%s689_s8] ss:$0 sm:$0xff] }
 0x26b   :  { %381 = dma.vmem_to_hbm [thread:$0]  %s376_s20, 256, %s691_s10, [#allocation5], %s536_s6, %s536_s6, %s537_s1  }
 0x26c   :  { %s538_s10 = smov [#allocation2]  }
 0x26d   :  { %s363_s24 = sshll.u32 %s538_s10, 4  ;;  %s364_s24 = int_to_ptr.vmem [resolvable:$true] %s363_s24 }
 0x26e   :  { %s509_s8 = scalar_lea.vmem %s364_s24, 256  ;;  %p514_p6 = scmp.lt.s32.totalorder %s364_s24, %s364_s24 }
 0x26f   :  { %p510_p5 = scmp.ne.s32.totalorder %s364_s24, %s509_s8  ;;  %p515_p7 = scmp.lt.s32.totalorder %s509_s8, %s509_s8 }
 0x271   :  { %p516_p8 = por %p515_p7, %p514_p6 }
 0x273   :  { %p517_p9 = pnand %p516_p8, %p510_p5 }
 0x328   :  { %v337_v44 = vpop.f32.mrf.mxu0 }
 0x329   :  { %v338_v45 = vadd.f32 %v403_v43, %v337_v44 }
 0x32a   :  { %v462_v46 = vpop.f32.mrf.mxu0 }
 0x32b   :  { %v409_v47 = vmul.f32 -1.442695, %v338_v45 }
 0x32c   :  { %v340_v48 = vpop.f32.mrf.mxu0 }
 0x32d   :  { %481 = vpow2.f32 %v409_v47  ;;  %v341_v49 = vadd.f32 %v403_v43, %v340_v48 }
 0x32e   :  { %v463_v50 = vpop.f32.mrf.mxu0 }
 0x32f   :  { %v410_v51 = vmul.f32 -1.442695, %v341_v49 }
 0x331   :  { %483 = vpow2.f32 %v410_v51 }
 0x33a   :  { %v482_v52 = vpop.eup %481 }
 0x33b   :  { %v350_v53 = vadd.f32 1.0, %v482_v52 }
 0x33d   :  { %485 = vrcp.f32 %v350_v53 }
 0x33e   :  { %v484_v54 = vpop.eup %483 }
 0x33f   :  { %v351_v55 = vadd.f32 1.0, %v484_v54 }
 0x341   :  { %487 = vrcp.f32 %v351_v55 }
 0x34a   :  { %v486_v56 = vpop.eup %485 }
 0x34b   :  { %356 = vst.msk [vmem:[#allocation2] sm:$0xff] %vm63_vm1, %v486_v56 }
 0x34e   :  { %v488_v57 = vpop.eup %487 }
 0x34f   :  { %357 = vst.msk [vmem:[#allocation2 + $0x8] sm:$0xff] %vm63_vm1, %v488_v57 }
 0x350   :  { %520 = shalt.err (!%p517_p9)
}
 0x351   :  { %369 = dma.vmem_to_hbm [thread:$0]  %s364_s24, 256, %s690_s9, [#allocation3], %s536_s6, %s536_s6, %s537_s1  }
 0x352   :  { %529 = dma.done.wait [#allocation3], 256  }
 0x353   :  { %530 = vsyncadd [#allocation3], 4294967040 }
 0x354   :  { %531 = dma.done.wait [#allocation5], 256  }
 0x355   :  { %532 = vsyncadd [#allocation5], 4294967040 }
 0x356   :  { %388 = vsyncpa [#allocation3], 1 }
 0x357   :  { %389 = vsyncpa [#allocation5], 1 }

</bundles_post_ra>
